<compile_context>
chip_gen: v5e
topology: v5e:2x2
jax: 0.10.0
libtpu: 0.0.40
codegen_flags: <defaults>
</compile_context>

<pallas_src>
import functools

import jax
import jax.numpy as jnp
from jax import lax
from jax.experimental import pallas as pl
from jax.experimental.pallas import tpu as pltpu

_VMEM_LIMIT = 48 * 1024 * 1024  # below v7x's 64 MiB physical VMEM, plenty for v5e/v6e


# -----------------------------------------------------------------------------
# Tile-size heuristics (VMEM-aware).
# -----------------------------------------------------------------------------
def _row_tile(n, l, e):
    """Encoder batch-row tile: multiple of 8 dividing n, VMEM-budgeted by L*E."""
    if n % 8 != 0:
        # TODO(synk): for non-8-multiple batches with huge L*E, add an 'arbitrary'
        # grid axis over L with a pooled-sum accumulator instead of one full block.
        return n
    # Two (tn, L, E) f32 input streams, double-buffered: 2 * 2 * L * E * 4 bytes/row.
    budget = 20 * 1024 * 1024
    cap = max(8, (budget // (2 * 2 * l * e * 4)) // 8 * 8)
    cap = min(cap, 128)
    if n >= 16:
        # >= 2 grid steps so v7x's two TensorCores both get work.
        cap = min(cap, max(8, (n // 2) // 8 * 8))
    for cand in range(cap, 7, -8):
        if n % cand == 0:
            return cand
    return 8


def _logits_row_tile(n):
    """Row tile for the logits kernel (full batch unless it is large)."""
    if n % 8 != 0 or n <= 256:
        return n
    for cand in (256, 128, 64, 32, 16, 8):
        if n % cand == 0:
            return cand
    return n


def _queue_tile(r1, d, tn2, qbytes):
    """Queue/logits column tile: large multiple of 128 under a VMEM budget."""
    budget = 24 * 1024 * 1024
    per_col = 2 * d * qbytes + 2 * tn2 * 4  # double-buffered queue col + out col
    cap = min(2048, max(128, (budget // per_col) // 128 * 128))
    if cap >= r1:
        return r1  # single full-width block (block dim == full array dim)
    return cap     # multiple of 128; trailing partial block is masked by Pallas


# -----------------------------------------------------------------------------
# Kernel 1: fused q/k encoder (sum-pool, 1/L folded into w) + L2 normalize + 1/T.
# -----------------------------------------------------------------------------
def _encode_qk_kernel(xq_ref, xk_ref, w_ref, b_ref, q_out_ref, k_out_ref, *, inv_t):
    w = w_ref[...]                                   # (E, D), resident in VMEM
    b = b_ref[...]                                   # (1, D)
    pooled_q = jnp.sum(xq_ref[...], axis=1)          # (tn, E); 1/L folded into w
    pooled_k = jnp.sum(xk_ref[...], axis=1)          # (tn, E)
    feat_q = jnp.dot(pooled_q, w, preferred_element_type=jnp.float32) + b
    feat_k = jnp.dot(pooled_k, w, preferred_element_type=jnp.float32) + b
    # F.normalize: x / max(||x||, 1e-12) == x * rsqrt(max(||x||^2, 1e-24))  (EUP)
    ssq_q = jnp.sum(feat_q * feat_q, axis=-1, keepdims=True)
    ssq_k = jnp.sum(feat_k * feat_k, axis=-1, keepdims=True)
    qn = feat_q * lax.rsqrt(jnp.maximum(ssq_q, 1e-24))
    kn = feat_k * lax.rsqrt(jnp.maximum(ssq_k, 1e-24))
    q_out_ref[...] = qn * inv_t                      # fold 1/temperature into q
    k_out_ref[...] = kn


def encode_qk(sen_q, sen_k, w_pool, b, temperature):
    N, L, E = sen_q.shape
    D = w_pool.shape[1]
    tn = _row_tile(N, L, E)
    kern = functools.partial(_encode_qk_kernel, inv_t=float(1.0 / temperature))
    flops = 2 * (N * L * E + 2 * N * E * D + 6 * N * D)
    bytes_acc = (2 * N * L * E + E * D + D + 2 * N * D) * 4
    return pl.pallas_call(
        kern,
        out_shape=(
            jax.ShapeDtypeStruct((N, D), jnp.float32),   # q * (1/T), normalized
            jax.ShapeDtypeStruct((N, D), jnp.float32),   # k, normalized
        ),
        grid=(N // tn,),
        in_specs=[
            pl.BlockSpec((tn, L, E), lambda i: (i, 0, 0)),
            pl.BlockSpec((tn, L, E), lambda i: (i, 0, 0)),
            pl.BlockSpec((E, D), lambda i: (0, 0)),
            pl.BlockSpec((1, D), lambda i: (0, 0)),
        ],
        out_specs=(
            pl.BlockSpec((tn, D), lambda i: (i, 0)),
            pl.BlockSpec((tn, D), lambda i: (i, 0)),
        ),
        compiler_params=pltpu.CompilerParams(
            dimension_semantics=("parallel",),
            vmem_limit_bytes=_VMEM_LIMIT),
        cost_estimate=pl.CostEstimate(
            flops=flops, transcendentals=2 * N, bytes_accessed=bytes_acc),
    )(sen_q, sen_k, w_pool, b)


# -----------------------------------------------------------------------------
# Kernel 2: logits = [l_pos | l_neg] / T written directly as (N, 1+r).
# Queue is stored shifted as (D, 1+r) (column 0 dead) so every block is aligned;
# l_pos overwrites column 0 at the first queue tile.
# -----------------------------------------------------------------------------
def _logits_kernel(q_ref, k_ref, queue_ref, out_ref):
    qtile = queue_ref[...].astype(jnp.float32)       # bf16 queue -> f32 in VMEM
    out_ref[...] = jnp.dot(q_ref[...], qtile, preferred_element_type=jnp.float32)

    @pl.when(pl.program_id(0) == 0)
    def _():
        # l_pos = (q/T) . k, written into column 0 (aligned 1-lane store).
        l_pos = jnp.sum(q_ref[...] * k_ref[...], axis=-1, keepdims=True)
        out_ref[:, 0:1] = l_pos


def moco_logits(q_scaled, k, queue_aug):
    N, D = q_scaled.shape
    r1 = queue_aug.shape[1]                          # == 1 + r
    qbytes = jnp.dtype(queue_aug.dtype).itemsize
    tn2 = _logits_row_tile(N)
    tc = _queue_tile(r1, D, tn2, qbytes)
    grid_r = pl.cdiv(r1, tc)
    grid_n = N // tn2
    flops = 2 * N * D * r1 + 2 * N * D
    bytes_acc = D * r1 * qbytes + (N * r1 + 2 * N * D) * 4
    return pl.pallas_call(
        _logits_kernel,
        out_shape=jax.ShapeDtypeStruct((N, r1), jnp.float32),
        grid=(grid_r, grid_n),                       # r-tiles outer, N-tiles inner:
        in_specs=[                                   # each queue tile is DMA'd once.
            pl.BlockSpec((tn2, D), lambda j, i: (i, 0)),
            pl.BlockSpec((tn2, D), lambda j, i: (i, 0)),
            pl.BlockSpec((D, tc), lambda j, i: (0, j)),
        ],
        out_specs=pl.BlockSpec((tn2, tc), lambda j, i: (i, j)),
        compiler_params=pltpu.CompilerParams(
            dimension_semantics=("parallel", "parallel"),
            vmem_limit_bytes=_VMEM_LIMIT),
        cost_estimate=pl.CostEstimate(
            flops=flops, transcendentals=0, bytes_accessed=bytes_acc),
    )(q_scaled, k, queue_aug)


# -----------------------------------------------------------------------------
# MoCo forward (functional): returns (logits, labels, new_queue_aug, new_ptr).
# The queue is kept in the shifted (D, 1+r) layout across steps; intended to be
# jitted with the queue argument donated so enqueue is an in-place slice write.
# -----------------------------------------------------------------------------
def augment_queue(queue):
    """(D, r) PyTorch-layout queue -> (D, 1+r) shifted storage (column 0 dead)."""
    D = queue.shape[0]
    return jnp.concatenate([jnp.zeros((D, 1), queue.dtype), queue], axis=1)


def moco_forward(sen_q, sen_k, params, queue_aug, queue_ptr, temperature):
    w, b = params
    N, L, _ = sen_q.shape
    r = queue_aug.shape[1] - 1
    assert r % N == 0, "queue size must be divisible by batch size (as in PyTorch MoCo)"
    # momentum update of the key encoder: exact no-op (encoder_q IS encoder_k).
    w_pool = w * (1.0 / L)                           # fold mean-pool 1/L into weights
    q_scaled, k = encode_qk(sen_q, sen_k, w_pool, b, temperature)
    logits = moco_logits(q_scaled, k, queue_aug)     # (N, 1+r), already / T
    labels = jnp.zeros((N,), dtype=jnp.int32)
    # dequeue & enqueue: queue[:, ptr:ptr+N] = k.T (column 0 of storage is dead).
    # With `queue_aug` donated under jit, XLA writes only the (D, N) slice in place.
    new_queue = lax.dynamic_update_slice(
        queue_aug, k.T.astype(queue_aug.dtype), (0, queue_ptr + 1))
    new_ptr = (queue_ptr + N) % r
    return logits, labels, new_queue, new_ptr


# -----------------------------------------------------------------------------
# Pure-JAX reference (for correctness check).
# -----------------------------------------------------------------------------
def _ref_encode(x, w, b):
    f = jnp.mean(x, axis=1) @ w + b[0]
    n = jnp.sqrt(jnp.sum(f * f, axis=-1, keepdims=True))
    return f / jnp.maximum(n, 1e-12)


def _ref_forward(sen_q, sen_k, w, b, queue, temperature):
    k = _ref_encode(sen_k, w, b)
    q = _ref_encode(sen_q, w, b)
    l_pos = jnp.einsum("nc,nc->n", q, k)[:, None]
    l_neg = jnp.einsum("nc,ck->nk", q, queue)
    return jnp.concatenate([l_pos, l_neg], axis=1) / temperature


if __name__ == "__main__":
    # Small shapes: batch N=8, seq L=8, embed E=32, feature dim D=32, queue r=64.
    N, L, E, D, r = 8, 8, 32, 32, 64
    T = 0.1

    key = jax.random.PRNGKey(0)
    k1, k2, k3, k4, k5 = jax.random.split(key, 5)

    sen_q = jax.random.normal(k1, (N, L, E), dtype=jnp.float32)
    sen_k = jax.random.normal(k2, (N, L, E), dtype=jnp.float32)

    # Deterministic encoder params (Linear E -> D).
    w = (jax.random.normal(k3, (E, D), dtype=jnp.float32) / jnp.sqrt(E)).astype(jnp.float32)
    b = jax.random.normal(k4, (1, D), dtype=jnp.float32) * 0.01

    # Queue buffer: randn(D, r), normalized along dim 0 (per column), PyTorch layout.
    queue = jax.random.normal(k5, (D, r), dtype=jnp.float32)
    queue = queue / jnp.maximum(
        jnp.sqrt(jnp.sum(queue * queue, axis=0, keepdims=True)), 1e-12)

    # References BEFORE the donated calls (only the augmented copies are donated).
    ref_logits = _ref_forward(sen_q, sen_k, w, b, queue, T)
    ref_k = _ref_encode(sen_k, w, b)
    queue_tail = jnp.asarray(queue[:, N:])
    jax.block_until_ready((ref_logits, ref_k, queue_tail))

    run = jax.jit(
        lambda sq, sk, w_, b_, qa, ptr: moco_forward(sq, sk, (w_, b_), qa, ptr, T),
        donate_argnums=(4,))

    # ---- f32 queue path (exact check) ----
    queue_aug = augment_queue(queue)
    logits, labels, new_queue, new_ptr = run(sen_q, sen_k, w, b, queue_aug, 0)
    jax.block_until_ready((logits, labels, new_queue, new_ptr))

    assert logits.shape == (N, 1 + r)
    assert labels.shape == (N,) and labels.dtype == jnp.int32
    assert jnp.allclose(logits, ref_logits, atol=1e-4, rtol=1e-4)
    assert jnp.allclose(new_queue[:, 1:1 + N], ref_k.T, atol=1e-5, rtol=1e-5)
    assert jnp.allclose(new_queue[:, 1 + N:], queue_tail)
    assert int(new_ptr) == (0 + N) % r

    # ---- bf16 queue path (halved queue HBM traffic; f32 cast happens in-kernel) ----
    queue_bf16 = queue.astype(jnp.bfloat16)
    ref_logits_bf16 = _ref_forward(sen_q, sen_k, w, b,
                                   queue_bf16.astype(jnp.float32), T)
    jax.block_until_ready(ref_logits_bf16)
    queue_aug_bf16 = augment_queue(queue_bf16)
    logits_b, _, new_queue_b, _ = run(sen_q, sen_k, w, b, queue_aug_bf16, 0)
    jax.block_until_ready((logits_b, new_queue_b))

    assert jnp.allclose(logits_b, ref_logits_bf16, atol=1e-3, rtol=1e-3)
    assert jnp.allclose(new_queue_b[:, 1:1 + N].astype(jnp.float32), ref_k.T,
                        atol=5e-3, rtol=5e-3)

    print("KERNEL_OK")
</pallas_src>

<mosaic_0001>
module attributes {stable_mosaic.version = 11 : i64} {
  func.func @_logits_kernel(%arg0: i32, %arg1: i32, %arg2: memref<8x32xf32, #tpu.memory_space<vmem>>, %arg3: memref<8x32xf32, #tpu.memory_space<vmem>>, %arg4: memref<32x65xf32, #tpu.memory_space<vmem>>, %arg5: memref<8x65xf32, #tpu.memory_space<vmem>>) attributes {dimension_semantics = [#tpu.dimension_semantics<parallel>, #tpu.dimension_semantics<parallel>], iteration_bounds = array<i64: 1, 1>, scalar_prefetch = 0 : i64, scratch_operands = 0 : i64, tpu.core_type = #tpu.core_type<tc>, window_params = [{transform_indices = @transform_0, window_bounds = array<i64: 8, 32>}, {transform_indices = @transform_1, window_bounds = array<i64: 8, 32>}, {transform_indices = @transform_2, window_bounds = array<i64: 32, 65>}, {transform_indices = @transform_3, window_bounds = array<i64: 8, 65>}]} {
    %c0 = arith.constant 0 : index
    %c0_0 = arith.constant 0 : index
    %0 = vector.load %arg4[%c0, %c0_0] : memref<32x65xf32, #tpu.memory_space<vmem>>, vector<32x65xf32>
    %c0_1 = arith.constant 0 : index
    %c0_2 = arith.constant 0 : index
    %1 = vector.load %arg2[%c0_1, %c0_2] : memref<8x32xf32, #tpu.memory_space<vmem>>, vector<8x32xf32>
    %cst = arith.constant dense<0.000000e+00> : vector<8x65xf32>
    %2 = tpu.matmul %1, %0, %cst {dimension_numbers = #tpu.dot_dimension_numbers<[1], [0], [0], [1], [0, 0, 1, 1], [], []>} : vector<8x32xf32>, vector<32x65xf32>, vector<8x65xf32> -> vector<8x65xf32>
    %c0_3 = arith.constant 0 : index
    %c0_4 = arith.constant 0 : index
    %3 = vector.load %arg5[%c0_3, %c0_4] : memref<8x65xf32, #tpu.memory_space<vmem>>, vector<8x65xf32>
    tpu.vector_store %arg5[%c0_3, %c0_4], %2 {strides = array<i32>} : memref<8x65xf32, #tpu.memory_space<vmem>>, vector<8x65xf32>,
    %c0_i32 = arith.constant 0 : i32
    %4 = arith.cmpi eq, %arg0, %c0_i32 : i32
    %5 = arith.extui %4 : i1 to i32
    %c0_i32_5 = arith.constant 0 : i32
    %6 = arith.cmpi ne, %5, %c0_i32_5 : i32
    scf.if %6 {
      %c0_6 = arith.constant 0 : index
      %c0_7 = arith.constant 0 : index
      %7 = vector.load %arg2[%c0_6, %c0_7] : memref<8x32xf32, #tpu.memory_space<vmem>>, vector<8x32xf32>
      %c0_8 = arith.constant 0 : index
      %c0_9 = arith.constant 0 : index
      %8 = vector.load %arg3[%c0_8, %c0_9] : memref<8x32xf32, #tpu.memory_space<vmem>>, vector<8x32xf32>
      %9 = arith.mulf %7, %8 : vector<8x32xf32>
      %cst_10 = arith.constant dense<0.000000e+00> : vector<8xf32>
      %10 = vector.multi_reduction <add>, %9, %cst_10 [1] : vector<8x32xf32> to vector<8xf32>
      %11 = vector.shape_cast %10 : vector<8xf32> to vector<8x1xf32>
      %c0_11 = arith.constant 0 : index
      %c0_12 = arith.constant 0 : index
      %12 = vector.load %arg5[%c0_11, %c0_12] : memref<8x65xf32, #tpu.memory_space<vmem>>, vector<8x1xf32>
      tpu.vector_store %arg5[%c0_11, %c0_12], %11 {strides = array<i32>} : memref<8x65xf32, #tpu.memory_space<vmem>>, vector<8x1xf32>,
    } else {
    }
    return
  }
  func.func @transform_0(%arg0: i32, %arg1: i32) -> (i32, i32) {
    %c0_i32 = arith.constant 0 : i32
    %c0_i32_0 = arith.constant 0 : i32
    return %arg1, %c0_i32 : i32, i32
  }
  func.func @transform_1(%arg0: i32, %arg1: i32) -> (i32, i32) {
    %c0_i32 = arith.constant 0 : i32
    %c0_i32_0 = arith.constant 0 : i32
    return %arg1, %c0_i32 : i32, i32
  }
  func.func @transform_2(%arg0: i32, %arg1: i32) -> (i32, i32) {
    %c0_i32 = arith.constant 0 : i32
    %c0_i32_0 = arith.constant 0 : i32
    return %c0_i32, %arg0 : i32, i32
  }
  func.func @transform_3(%arg0: i32, %arg1: i32) -> (i32, i32) {
    %c0_i32 = arith.constant 0 : i32
    return %arg1, %arg0 : i32, i32
  }
}

module attributes {stable_mosaic.version = 11 : i64} {
  func.func @_encode_qk_kernel(%arg0: i32, %arg1: memref<8x8x32xf32, #tpu.memory_space<vmem>>, %arg2: memref<8x8x32xf32, #tpu.memory_space<vmem>>, %arg3: memref<32x32xf32, #tpu.memory_space<vmem>>, %arg4: memref<1x32xf32, #tpu.memory_space<vmem>>, %arg5: memref<8x32xf32, #tpu.memory_space<vmem>>, %arg6: memref<8x32xf32, #tpu.memory_space<vmem>>) attributes {dimension_semantics = [#tpu.dimension_semantics<parallel>], iteration_bounds = array<i64: 1>, scalar_prefetch = 0 : i64, scratch_operands = 0 : i64, tpu.core_type = #tpu.core_type<tc>, window_params = [{transform_indices = @transform_0, window_bounds = array<i64: 8, 8, 32>}, {transform_indices = @transform_1, window_bounds = array<i64: 8, 8, 32>}, {pipeline_mode = #tpu.pipeline_mode<synchronous>, transform_indices = @transform_2, window_bounds = array<i64: 32, 32>}, {pipeline_mode = #tpu.pipeline_mode<synchronous>, transform_indices = @transform_3, window_bounds = array<i64: 1, 32>}, {transform_indices = @transform_4, window_bounds = array<i64: 8, 32>}, {transform_indices = @transform_5, window_bounds = array<i64: 8, 32>}]} {
    %c0 = arith.constant 0 : index
    %c0_0 = arith.constant 0 : index
    %0 = vector.load %arg3[%c0, %c0_0] : memref<32x32xf32, #tpu.memory_space<vmem>>, vector<32x32xf32>
    %c0_1 = arith.constant 0 : index
    %c0_2 = arith.constant 0 : index
    %1 = vector.load %arg4[%c0_1, %c0_2] : memref<1x32xf32, #tpu.memory_space<vmem>>, vector<1x32xf32>
    %c0_3 = arith.constant 0 : index
    %c0_4 = arith.constant 0 : index
    %c0_5 = arith.constant 0 : index
    %2 = vector.load %arg1[%c0_3, %c0_4, %c0_5] : memref<8x8x32xf32, #tpu.memory_space<vmem>>, vector<8x8x32xf32>
    %cst = arith.constant dense<0.000000e+00> : vector<8x32xf32>
    %3 = vector.multi_reduction <add>, %2, %cst [1] : vector<8x8x32xf32> to vector<8x32xf32>
    %c0_6 = arith.constant 0 : index
    %c0_7 = arith.constant 0 : index
    %c0_8 = arith.constant 0 : index
    %4 = vector.load %arg2[%c0_6, %c0_7, %c0_8] : memref<8x8x32xf32, #tpu.memory_space<vmem>>, vector<8x8x32xf32>
    %cst_9 = arith.constant dense<0.000000e+00> : vector<8x32xf32>
    %5 = vector.multi_reduction <add>, %4, %cst_9 [1] : vector<8x8x32xf32> to vector<8x32xf32>
    %cst_10 = arith.constant dense<0.000000e+00> : vector<8x32xf32>
    %6 = tpu.matmul %3, %0, %cst_10 {dimension_numbers = #tpu.dot_dimension_numbers<[1], [0], [0], [1], [0, 0, 1, 1], [], []>} : vector<8x32xf32>, vector<32x32xf32>, vector<8x32xf32> -> vector<8x32xf32>
    %7 = vector.broadcast %1 : vector<1x32xf32> to vector<8x32xf32>
    %8 = arith.addf %6, %7 : vector<8x32xf32>
    %cst_11 = arith.constant dense<0.000000e+00> : vector<8x32xf32>
    %9 = tpu.matmul %5, %0, %cst_11 {dimension_numbers = #tpu.dot_dimension_numbers<[1], [0], [0], [1], [0, 0, 1, 1], [], []>} : vector<8x32xf32>, vector<32x32xf32>, vector<8x32xf32> -> vector<8x32xf32>
    %10 = vector.broadcast %1 : vector<1x32xf32> to vector<8x32xf32>
    %11 = arith.addf %9, %10 : vector<8x32xf32>
    %12 = arith.mulf %8, %8 : vector<8x32xf32>
    %cst_12 = arith.constant dense<0.000000e+00> : vector<8xf32>
    %13 = vector.multi_reduction <add>, %12, %cst_12 [1] : vector<8x32xf32> to vector<8xf32>
    %14 = vector.shape_cast %13 : vector<8xf32> to vector<8x1xf32>
    %15 = arith.mulf %11, %11 : vector<8x32xf32>
    %cst_13 = arith.constant dense<0.000000e+00> : vector<8xf32>
    %16 = vector.multi_reduction <add>, %15, %cst_13 [1] : vector<8x32xf32> to vector<8xf32>
    %17 = vector.shape_cast %16 : vector<8xf32> to vector<8x1xf32>
    %cst_14 = arith.constant 1.000000e-24 : f32
    %18 = vector.broadcast %cst_14 : f32 to vector<8x1xf32>
    %19 = arith.maximumf %14, %18 : vector<8x1xf32>
    %20 = math.rsqrt %19 : vector<8x1xf32>
    %21 = vector.broadcast %20 : vector<8x1xf32> to vector<8x32xf32>
    %22 = arith.mulf %8, %21 : vector<8x32xf32>
    %cst_15 = arith.constant 1.000000e-24 : f32
    %23 = vector.broadcast %cst_15 : f32 to vector<8x1xf32>
    %24 = arith.maximumf %17, %23 : vector<8x1xf32>
    %25 = math.rsqrt %24 : vector<8x1xf32>
    %26 = vector.broadcast %25 : vector<8x1xf32> to vector<8x32xf32>
    %27 = arith.mulf %11, %26 : vector<8x32xf32>
    %cst_16 = arith.constant 1.000000e+01 : f32
    %28 = vector.broadcast %cst_16 : f32 to vector<8x32xf32>
    %29 = arith.mulf %22, %28 : vector<8x32xf32>
    %c0_17 = arith.constant 0 : index
    %c0_18 = arith.constant 0 : index
    %30 = vector.load %arg5[%c0_17, %c0_18] : memref<8x32xf32, #tpu.memory_space<vmem>>, vector<8x32xf32>
    tpu.vector_store %arg5[%c0_17, %c0_18], %29 {strides = array<i32>} : memref<8x32xf32, #tpu.memory_space<vmem>>, vector<8x32xf32>,
    %c0_19 = arith.constant 0 : index
    %c0_20 = arith.constant 0 : index
    %31 = vector.load %arg6[%c0_19, %c0_20] : memref<8x32xf32, #tpu.memory_space<vmem>>, vector<8x32xf32>
    tpu.vector_store %arg6[%c0_19, %c0_20], %27 {strides = array<i32>} : memref<8x32xf32, #tpu.memory_space<vmem>>, vector<8x32xf32>,
    return
  }
  func.func @transform_0(%arg0: i32) -> (i32, i32, i32) {
    %c0_i32 = arith.constant 0 : i32
    %c0_i32_0 = arith.constant 0 : i32
    %c0_i32_1 = arith.constant 0 : i32
    return %arg0, %c0_i32, %c0_i32_0 : i32, i32, i32
  }
  func.func @transform_1(%arg0: i32) -> (i32, i32, i32) {
    %c0_i32 = arith.constant 0 : i32
    %c0_i32_0 = arith.constant 0 : i32
    %c0_i32_1 = arith.constant 0 : i32
    return %arg0, %c0_i32, %c0_i32_0 : i32, i32, i32
  }
  func.func @transform_2(%arg0: i32) -> (i32, i32) {
    %c0_i32 = arith.constant 0 : i32
    %c0_i32_0 = arith.constant 0 : i32
    %c0_i32_1 = arith.constant 0 : i32
    return %c0_i32, %c0_i32_0 : i32, i32
  }
  func.func @transform_3(%arg0: i32) -> (i32, i32) {
    %c0_i32 = arith.constant 0 : i32
    %c0_i32_0 = arith.constant 0 : i32
    %c0_i32_1 = arith.constant 0 : i32
    return %c0_i32, %c0_i32_0 : i32, i32
  }
  func.func @transform_4(%arg0: i32) -> (i32, i32) {
    %c0_i32 = arith.constant 0 : i32
    %c0_i32_0 = arith.constant 0 : i32
    return %arg0, %c0_i32 : i32, i32
  }
  func.func @transform_5(%arg0: i32) -> (i32, i32) {
    %c0_i32 = arith.constant 0 : i32
    %c0_i32_0 = arith.constant 0 : i32
    return %arg0, %c0_i32 : i32, i32
  }
}

</mosaic_0001>

<bundles_post_ra>
// kernel: _lambda_.2
= control target key start
LH: loop header
LB: loop body
LE: loop exit
PB: predicated region body
PF: predicated region fallthrough
CT: control target
= control target key end

     0   :  { %11 = vsyncpa [#allocation3], 0  ;;  %s333_s21 = smov [#allocation2]   ;;  %s334_s23 = smov 128   ;;  %s450_s0 = inlined_call_operand.vmem [shape: f32[8,8,32], index: 0, kind: input, shape index: {}]   ;;  %s451_s1 = inlined_call_operand.hbm [shape: f32[8,8,32], index: 1, kind: input, shape index: {}]   ;;  %s452_s2 = inlined_call_operand.vmem [shape: f32[32,32], index: 2, kind: input, shape index: {}]   ;;  %s453_s3 = inlined_call_operand.vmem [shape: f32[1,32], index: 3, kind: input, shape index: {}]   ;;  %s454_s4 = inlined_call_operand.vmem [shape: f32[8,32], index: 4, kind: output, shape index: {0}]   ;;  %s455_s5 = inlined_call_operand.vmem [shape: f32[8,32], index: 5, kind: output, shape index: {1}]  }
   0x1   :  { %s18_s20 = sshll.u32 %s451_s1, 4  ;;  %s20_s22 = sshll.u32 %s333_s21, 4  ;;  %s19_s20 = int_to_ptr.hbm [resolvable:$true] %s18_s20  ;;  %s21_s22 = int_to_ptr.vmem [resolvable:$true] %s20_s22 }
   0x2   :  { %s335_s24 = smov 8  }
   0x3   :  { %26 = dma.hbm_to_vmem [thread:$0]  %s19_s20, 1024, %s21_s22, [#allocation3], %s334_s23, %s334_s23, %s335_s24  }
   0x4   :  { %331 = dma.done.wait [#allocation3], 1024  }
   0x5   :  { %332 = vsyncadd [#allocation3], 4294966272  ;;  %vm48_vm0 = vcmask 261120   ;;  %v38_v0 = vld [vmem:[%s452_s2 + $0x18] sm:$0xff]  ;;  %v37_v1 = vld [vmem:[%s452_s2 + $0x10] sm:$0xff]  ;;  %vm180_vm1 = vcmask 1041409  }
   0x6   :  { %208 = vmatpush.msra.mxu0 %v38_v0  ;;  %v36_v2 = vld [vmem:[%s452_s2 + $0x8] sm:$0xff]  ;;  %v40_v3 = vld [vmem:[%s450_s0] sm:$0xff]  ;;  %245 = vmatpush.msra.mxu1 %v38_v0  ;;  %v42_v5 = vld [vmem:[%s450_s0 + $0x10] sm:$0xff]  ;;  %vm182_vm2 = vcmask 1042434   ;;  %vm184_vm3 = vcmask 1043459   ;;  %vm186_vm4 = vcmask 1044484  }
   0x7   :  { %v41_v4 = vld [vmem:[%s450_s0 + $0x8] sm:$0xff]  ;;  %v43_v6 = vld [vmem:[%s450_s0 + $0x18] sm:$0xff]  ;;  %v44_v7 = vld [vmem:[%s450_s0 + $0x20] sm:$0xff]  ;;  %v49_v8 = vsel %vm48_vm0, %v40_v3, 0.0  ;;  %v63_v15 = vsel %vm48_vm0, %v42_v5, 0.0  ;;  %vm188_vm5 = vcmask 1045509  }
   0x8   :  { %v56_v9 = vsel %vm48_vm0, %v41_v4, 0.0  ;;  %209 = vmatpush.msra.mxu0 %v37_v1  ;;  %v45_v10 = vld [vmem:[%s450_s0 + $0x28] sm:$0xff]  ;;  %v46_v11 = vld [vmem:[%s450_s0 + $0x30] sm:$0xff]  ;;  %v47_v12 = vld [vmem:[%s450_s0 + $0x38] sm:$0xff]  ;;  %v50_v13 = vrot.slane %v49_v8, 4  ;;  %246 = vmatpush.msra.mxu1 %v37_v1  ;;  %v64_v17 = vrot.slane %v63_v15, 4 }
   0x9   :  { %v57_v14 = vrot.slane %v56_v9, 4  ;;  %v35_v16 = vld [vmem:[%s452_s2] sm:$0xff]  ;;  %v70_v18 = vsel %vm48_vm0, %v43_v6, 0.0  ;;  %v77_v19 = vsel %vm48_vm0, %v44_v7, 0.0  ;;  %v84_v20 = vsel %vm48_vm0, %v45_v10, 0.0  ;;  %v106_v62 = vld [vmem:[#allocation2 + $0x8] sm:$0xff] }
   0xa   :  { %210 = vmatpush.msra.mxu0 %v36_v2  ;;  %v51_v21 = vadd.f32 %v50_v13, %v49_v8  ;;  %v71_v23 = vrot.slane %v70_v18, 4  ;;  %v78_v24 = vrot.slane %v77_v19, 4  ;;  %247 = vmatpush.msra.mxu1 %v36_v2  ;;  %v65_v25 = vadd.f32 %v64_v17, %v63_v15  ;;  %v105_v53 = vld [vmem:[#allocation2] sm:$0xff]  ;;  %v107_v63 = vld [vmem:[#allocation2 + $0x10] sm:$0xff]  ;;  %v108_v8 = vld [vmem:[#allocation2 + $0x18] sm:$0xff] }
   0xb   :  { %v58_v22 = vadd.f32 %v57_v14, %v56_v9  ;;  %v85_v26 = vrot.slane %v84_v20, 4  ;;  %v91_v27 = vsel %vm48_vm0, %v46_v11, 0.0  ;;  %v98_v28 = vsel %vm48_vm0, %v47_v12, 0.0  ;;  %v109_v10 = vld [vmem:[#allocation2 + $0x20] sm:$0xff] }
   0xc   :  { %211 = vmatpush.msra.mxu0 %v35_v16  ;;  %v52_v29 = vrot.slane %v51_v21, 2  ;;  %v72_v31 = vadd.f32 %v71_v23, %v70_v18  ;;  %v79_v32 = vadd.f32 %v78_v24, %v77_v19  ;;  %248 = vmatpush.msra.mxu1 %v35_v16  ;;  %v66_v33 = vrot.slane %v65_v25, 2  ;;  %v110_v19 = vld [vmem:[#allocation2 + $0x28] sm:$0xff] }
   0xd   :  { %v59_v30 = vrot.slane %v58_v22, 2  ;;  %v86_v34 = vadd.f32 %v85_v26, %v84_v20  ;;  %v92_v35 = vrot.slane %v91_v27, 4  ;;  %v99_v36 = vrot.slane %v98_v28, 4  ;;  %v111_v20 = vld [vmem:[#allocation2 + $0x30] sm:$0xff] }
   0xe   :  { %v53_v37 = vadd.f32 %v52_v29, %v51_v21  ;;  %v73_v39 = vrot.slane %v72_v31, 2  ;;  %v80_v40 = vrot.slane %v79_v32, 2  ;;  %vm190_vm6 = vcmask 1046534   ;;  %v112_v29 = vld [vmem:[#allocation2 + $0x38] sm:$0xff] }
   0xf   :  { %v60_v38 = vadd.f32 %v59_v30, %v58_v22  ;;  %v67_v41 = vadd.f32 %v66_v33, %v65_v25  ;;  %v87_v42 = vrot.slane %v86_v34, 2  ;;  %v93_v43 = vadd.f32 %v92_v35, %v91_v27 }
  0x10   :  { %v100_v44 = vadd.f32 %v99_v36, %v98_v28  ;;  %vm192_vm7 = vcmask 1047559   ;;  %v54_v45 = vrot.slane %v53_v37, 1  ;;  %v74_v47 = vadd.f32 %v73_v39, %v72_v31 }
  0x11   :  { %v61_v46 = vrot.slane %v60_v38, 1  ;;  %v81_v48 = vadd.f32 %v80_v40, %v79_v32  ;;  %v68_v49 = vrot.slane %v67_v41, 1  ;;  %v88_v50 = vadd.f32 %v87_v42, %v86_v34 }
  0x12   :  { %v94_v51 = vrot.slane %v93_v43, 2  ;;  %v101_v52 = vrot.slane %v100_v44, 2  ;;  %v55_v54 = vadd.f32 %v54_v45, %v53_v37  ;;  %v75_v56 = vrot.slane %v74_v47, 1 }
  0x13   :  { %v62_v55 = vadd.f32 %v61_v46, %v60_v38  ;;  %v82_v57 = vrot.slane %v81_v48, 1  ;;  %v69_v58 = vadd.f32 %v68_v49, %v67_v41  ;;  %v89_v59 = vrot.slane %v88_v50, 1 }
  0x14   :  { %v95_v60 = vadd.f32 %v94_v51, %v93_v43  ;;  %v102_v61 = vadd.f32 %v101_v52, %v100_v44  ;;  %v76_v0 = vadd.f32 %v75_v56, %v74_v47  ;;  %v113_v3 = vsel %vm48_vm0, %v105_v53, 0.0 }
  0x15   :  { %v83_v1 = vadd.f32 %v82_v57, %v81_v48  ;;  %v181_v2 = vsel %vm180_vm1, %v62_v55, %v55_v54  ;;  %v90_v4 = vadd.f32 %v89_v59, %v88_v50  ;;  %v114_v11 = vrot.slane %v113_v3, 4 }
  0x16   :  { %v96_v5 = vrot.slane %v95_v60, 1  ;;  %v103_v6 = vrot.slane %v102_v61, 1  ;;  %v183_v7 = vsel %vm182_vm2, %v69_v58, %v181_v2  ;;  %v120_v12 = vsel %vm48_vm0, %v106_v62, 0.0 }
  0x17   :  { %v185_v9 = vsel %vm184_vm3, %v76_v0, %v183_v7  ;;  %v127_v13 = vsel %vm48_vm0, %v107_v63, 0.0  ;;  %v121_v17 = vrot.slane %v120_v12, 4  ;;  %v115_v21 = vadd.f32 %v114_v11, %v113_v3 }
  0x18   :  { %v97_v14 = vadd.f32 %v96_v5, %v95_v60  ;;  %v104_v15 = vadd.f32 %v103_v6, %v102_v61  ;;  %v187_v16 = vsel %vm186_vm4, %v83_v1, %v185_v9  ;;  %v128_v22 = vrot.slane %v127_v13, 4 }
  0x19   :  { %v189_v18 = vsel %vm188_vm5, %v90_v4, %v187_v16  ;;  %v134_v23 = vsel %vm48_vm0, %v108_v8, 0.0  ;;  %v122_v25 = vadd.f32 %v121_v17, %v120_v12  ;;  %v141_v27 = vsel %vm48_vm0, %v109_v10, 0.0 }
  0x1a   :  { %v191_v24 = vsel %vm190_vm6, %v97_v14, %v189_v18  ;;  %v135_v26 = vrot.slane %v134_v23, 4  ;;  %v116_v30 = vrot.slane %v115_v21, 2  ;;  %v129_v31 = vadd.f32 %v128_v22, %v127_v13  ;;  %v302_v18 = vld [vmem:[%s453_s3] ss:$0 sm:$0xff] }
  0x1b   :  { %v193_v28 = vsel %vm192_vm7, %v104_v15, %v191_v24  ;;  %v142_v32 = vrot.slane %v141_v27, 4  ;;  %v123_v33 = vrot.slane %v122_v25, 2  ;;  %v148_v35 = vsel %vm48_vm0, %v110_v19, 0.0 }
  0x1c   :  { %297 = vmatmul.msk.f32.vlgmr.msra.gmra.mxu0 %vm48_vm0, %v193_v28  ;;  %v136_v34 = vadd.f32 %v135_v26, %v134_v23  ;;  %v155_v36 = vsel %vm48_vm0, %v111_v20, 0.0  ;;  %v117_v37 = vadd.f32 %v116_v30, %v115_v21  ;;  %v130_v38 = vrot.slane %v129_v31, 2 }
  0x1d   :  { %v143_v39 = vadd.f32 %v142_v32, %v141_v27  ;;  %v149_v40 = vrot.slane %v148_v35, 4  ;;  %v124_v41 = vadd.f32 %v123_v33, %v122_v25  ;;  %v156_v43 = vrot.slane %v155_v36, 4 }
  0x1e   :  { %v137_v42 = vrot.slane %v136_v34, 2  ;;  %v162_v44 = vsel %vm48_vm0, %v112_v29, 0.0  ;;  %v118_v45 = vrot.slane %v117_v37, 1  ;;  %v131_v46 = vadd.f32 %v130_v38, %v129_v31 }
  0x1f   :  { %v144_v47 = vrot.slane %v143_v39, 2  ;;  %v150_v48 = vadd.f32 %v149_v40, %v148_v35  ;;  %v125_v49 = vrot.slane %v124_v41, 1  ;;  %v157_v51 = vadd.f32 %v156_v43, %v155_v36 }
  0x20   :  { %v138_v50 = vadd.f32 %v137_v42, %v136_v34  ;;  %v163_v52 = vrot.slane %v162_v44, 4  ;;  %v119_v53 = vadd.f32 %v118_v45, %v117_v37  ;;  %v132_v54 = vrot.slane %v131_v46, 1 }
  0x21   :  { %v145_v55 = vadd.f32 %v144_v47, %v143_v39  ;;  %v151_v56 = vrot.slane %v150_v48, 2  ;;  %v126_v57 = vadd.f32 %v125_v49, %v124_v41  ;;  %v158_v59 = vrot.slane %v157_v51, 2 }
  0x22   :  { %v139_v58 = vrot.slane %v138_v50, 1  ;;  %v164_v60 = vadd.f32 %v163_v52, %v162_v44  ;;  %v133_v61 = vadd.f32 %v132_v54, %v131_v46 }
  0x23   :  { %v146_v62 = vrot.slane %v145_v55, 1  ;;  %v152_v63 = vadd.f32 %v151_v56, %v150_v48  ;;  %v159_v1 = vadd.f32 %v158_v59, %v157_v51  ;;  %v224_v3 = vsel %vm180_vm1, %v126_v57, %v119_v53 }
  0x24   :  { %v140_v0 = vadd.f32 %v139_v58, %v138_v50  ;;  %v165_v2 = vrot.slane %v164_v60, 2  ;;  %v225_v6 = vsel %vm182_vm2, %v133_v61, %v224_v3 }
  0x25   :  { %v147_v4 = vadd.f32 %v146_v62, %v145_v55  ;;  %v153_v5 = vrot.slane %v152_v63, 1  ;;  %v160_v7 = vrot.slane %v159_v1, 1 }
  0x26   :  { %v166_v8 = vadd.f32 %v165_v2, %v164_v60  ;;  %v226_v9 = vsel %vm184_vm3, %v140_v0, %v225_v6 }
  0x27   :  { %v154_v10 = vadd.f32 %v153_v5, %v152_v63  ;;  %v227_v11 = vsel %vm186_vm4, %v147_v4, %v226_v9  ;;  %v161_v12 = vadd.f32 %v160_v7, %v159_v1 }
  0x28   :  { %v167_v13 = vrot.slane %v166_v8, 1 }
  0x29   :  { %v228_v14 = vsel %vm188_vm5, %v154_v10, %v227_v11 }
  0x2a   :  { %v168_v15 = vadd.f32 %v167_v13, %v166_v8  ;;  %v229_v16 = vsel %vm190_vm6, %v161_v12, %v228_v14 }
  0x2c   :  { %v230_v17 = vsel %vm192_vm7, %v168_v15, %v229_v16 }
  0x2d   :  { %298 = vmatmul.msk.f32.vlgmr.msra.gmra.mxu1 %vm48_vm0, %v230_v17 }
  0x99   :  { %v213_v19 = vpop.f32.mrf.mxu0 }
  0x9a   :  { %v214_v20 = vadd.f32 %v302_v18, %v213_v19 }
  0x9c   :  { %v253_v21 = vmul.f32 %v214_v20, %v214_v20 }
  0x9e   :  { %v254_v22 = vsel %vm48_vm0, %v253_v21, 0.0 }
  0x9f   :  { %255 = vadd.xlane.f32.xlu0 %v254_v22 }
  0xaa   :  { %v250_v23 = vpop.f32.mrf.mxu1 }
  0xab   :  { %v251_v24 = vadd.f32 %v302_v18, %v250_v23 }
  0xad   :  { %v257_v25 = vmul.f32 %v251_v24, %v251_v24 }
  0xaf   :  { %v258_v26 = vsel %vm48_vm0, %v257_v25, 0.0 }
  0xb0   :  { %259 = vadd.xlane.f32.xlu0 %v258_v26 }
 0x112   :  { %v256_v27 = vpop.xlane.xlu0 %255 }
 0x113   :  { %v261_v28 = vmax.f32 %v256_v27, 1e-24 }
 0x115   :  { %303 = vrsqrt.f32 %v261_v28  ;;  %vm268_vm9 = vweird.f32 %v261_v28 }
 0x11b   :  { %v304_v29 = vpop.eup %303 }
 0x11c   :  { %v263_v30 = vmul.f32 %v304_v29, %v261_v28  ;;  %vm269_vm8 = vweird.f32 %v304_v29 }
 0x11d   :  { %vm270_vm10 = vmor %vm268_vm9, %vm269_vm8 }
 0x11e   :  { %v264_v31 = vmul.f32 %v304_v29, %v263_v30 }
 0x120   :  { %v265_v32 = vmul.f32 0.5, %v264_v31 }
 0x122   :  { %v266_v33 = vsub.f32 1.5, %v265_v32 }
 0x123   :  { %v260_v34 = vpop.xlane.xlu0 %259 }
 0x124   :  { %v267_v35 = vmul.f32 %v304_v29, %v266_v33  ;;  %v273_v36 = vmax.f32 %v260_v34, 1e-24 }
 0x126   :  { %v271_v37 = vsel %vm270_vm10, %v304_v29, %v267_v35  ;;  %305 = vrsqrt.f32 %v273_v36  ;;  %vm280_vm12 = vweird.f32 %v273_v36 }
 0x127   :  { %v272_v38 = vmul.f32 %v271_v37, %v214_v20 }
 0x129   :  { %v285_v39 = vmul.f32 10.0, %v272_v38 }
 0x12b   :  { %286 = vst.msk [vmem:[%s454_s4] sm:$0xff] %vm48_vm0, %v285_v39 }
 0x12c   :  { %v306_v40 = vpop.eup %305 }
 0x12d   :  { %v275_v41 = vmul.f32 %v306_v40, %v273_v36  ;;  %vm281_vm11 = vweird.f32 %v306_v40 }
 0x12e   :  { %vm282_vm13 = vmor %vm280_vm12, %vm281_vm11 }
 0x12f   :  { %v276_v42 = vmul.f32 %v306_v40, %v275_v41 }
 0x131   :  { %v277_v43 = vmul.f32 0.5, %v276_v42 }
 0x133   :  { %v278_v44 = vsub.f32 1.5, %v277_v43 }
 0x135   :  { %v279_v45 = vmul.f32 %v306_v40, %v278_v44 }
 0x137   :  { %v283_v46 = vsel %vm282_vm13, %v306_v40, %v279_v45 }
 0x138   :  { %v284_v47 = vmul.f32 %v283_v46, %v251_v24 }
 0x13a   :  { %287 = vst.msk [vmem:[%s455_s5] sm:$0xff] %vm48_vm0, %v284_v47 }
 0x13b   :  { %296 = vsyncpa [#allocation3], 1 }

// kernel: _lambda_.3
= control target key start
LH: loop header
LB: loop body
LE: loop exit
PB: predicated region body
PF: predicated region fallthrough
CT: control target
= control target key end

     0   :  { %s144_s0 = inlined_call_operand.vmem [shape: f32[8,32], index: 0, kind: input, shape index: {}]   ;;  %s145_s1 = inlined_call_operand.vmem [shape: f32[8,32], index: 1, kind: input, shape index: {}]   ;;  %s146_s2 = inlined_call_operand.vmem [shape: f32[32,65], index: 2, kind: input, shape index: {}]   ;;  %s147_s3 = inlined_call_operand.hbm [shape: f32[8,65], index: 3, kind: output, shape index: {}]  }
   0x1   :  { %v18_v0 = vld [vmem:[%s146_s2 + $0x18] sm:$0xff]  ;;  %v17_v1 = vld [vmem:[%s146_s2 + $0x10] sm:$0xff]  ;;  %v19_v2 = vld [vmem:[%s144_s0] sm:$0xff] }
   0x2   :  { %36 = vmatpush.msra.mxu0 %v18_v0  ;;  %v51_v3 = vld [vmem:[%s145_s1] sm:$0xff]  ;;  %v16_v4 = vld [vmem:[%s146_s2 + $0x8] sm:$0xff] }
   0x3   :  { %v52_v5 = vmul.f32 %v51_v3, %v19_v2 }
   0x4   :  { %8 = vsyncpa [#allocation3], 0  ;;  %37 = vmatpush.msra.mxu0 %v17_v1  ;;  %vm20_vm0 = vcmask 261120   ;;  %v15_v6 = vld [vmem:[%s146_s2] sm:$0xff]  ;;  %s102_s0 = smov [#allocation2]   ;;  %s65_s26 = sshll.u32 %s147_s3, 4  ;;  %s66_s26 = int_to_ptr.hbm [resolvable:$true] %s65_s26 }
   0x5   :  { %v53_v7 = vsel %vm20_vm0, %v52_v5, 0.0  ;;  %s63_s24 = sshll.u32 %s102_s0, 4  ;;  %vm44_vm1 = vcmask 531456   ;;  %vm56_vm2 = vcmask 7168   ;;  %s64_s24 = int_to_ptr.vmem [resolvable:$true] %s63_s24 }
   0x6   :  { %38 = vmatpush.msra.mxu0 %v16_v4  ;;  %54 = vadd.xlane.f32.xlu0 %v53_v7 }
   0x8   :  { %39 = vmatpush.msra.mxu0 %v15_v6 }
   0x9   :  { %74 = vmatmul.msk.f32.vlgmr.msra.gmra.mxu0 %vm20_vm0, %v19_v2 }
  0x79   :  { %v55_v8 = vpop.xlane.xlu0 %54 }
  0x86   :  { %v41_v9 = vpop.f32.mrf.mxu0 }
  0x87   :  { %45 = vst.msk [vmem:[#allocation2] sm:$0xff] %vm44_vm1, %v41_v9 }
  0x88   :  { %57 = vst.msk [vmem:[#allocation2] sm:$0xff] %vm56_vm2, %v55_v8 }
  0x89   :  { %68 = dma.vmem_to_hbm [thread:$0]  %s64_s24, 128, %s66_s26, [#allocation3]  }
  0x8a   :  { %100 = dma.done.wait [#allocation3], 128  }
  0x8b   :  { %101 = vsyncadd [#allocation3], 4294967168 }
  0x8c   :  { %73 = vsyncpa [#allocation3], 1 }

</bundles_post_ra>
